<compile_context>
chip_gen: v7x
topology: tpu7x:2x2x1
jax: 0.10.0
libtpu: 0.0.40
codegen_flags: <defaults>
</compile_context>

<pallas_src>
import functools

import jax
import jax.numpy as jnp
from jax import lax
from jax.experimental import pallas as pl
from jax.experimental.pallas import tpu as pltpu


# ----------------------------- config (small, synthetic) --------------------
OUTPUT_HIDDEN_SIZE = 32     # config.output_hidden_size  (C)
ADAPTER_KERNEL_SIZE = 3     # config.adapter_kernel_size (K) -- HF default
ADAPTER_STRIDE = 2          # config.adapter_stride      (S) -- HF default
CONV_PAD = 1                # padding=1 is hard-coded in the module

BATCH = 2
SEQ = 16                    # T (conv spatial / time dim)


# ----------------------------- Pallas kernel --------------------------------
def _adapter_glu_kernel(xq_ref, w_ref, b_ref, o_ref, *, c, t_out):
    """Fused Conv1d(C->2C, K=3, stride=2, pad=1) + GLU, channel-last layout.

    xq_ref: (B*T_out, 2C) bf16  stride-packed input, row r = (b, t):
              xq[r, 0:C]  = x[b, :, 2t]      (channel-last)
              xq[r, C:2C] = x[b, :, 2t+1]
    w_ref:  (K*C, 2C)     bf16  im2col weight, row = k*C + c_in, col = c_out
    b_ref:  (1, 2C)       f32   conv bias
    o_ref:  (B*T_out, C)  f32   GLU output (channel-last)
    """
    xq = xq_ref[...]                                     # (BT, 2C)
    w = w_ref[...]                                       # (K*C, 2C)
    bias = b_ref[...]                                    # (1, 2C)
    bt = xq.shape[0]

    # Output position t consumes original time steps {2t-1, 2t, 2t+1}:
    #   tap k=0 -> x[2t-1]: second half of packed row r-1; at t == 0 of every
    #              batch it is the conv's left zero padding (masked select).
    #   taps k=1,2 -> x[2t], x[2t+1]: exactly packed row r.
    shifted = jnp.concatenate(
        [jnp.zeros((1, c), xq.dtype), xq[:bt - 1, c:]], axis=0)      # (BT, C)
    row = lax.broadcasted_iota(jnp.int32, (bt, 1), 0)
    tap0 = jnp.where(row % t_out == 0, jnp.zeros_like(shifted), shifted)

    xcol = jnp.concatenate([tap0, xq], axis=-1)          # (BT, K*C) im2col

    # Single MXU matmul for the whole batch, contraction K*C, f32 accumulation.
    y = jnp.dot(xcol, w, preferred_element_type=jnp.float32) + bias  # (BT, 2C)

    # GLU over channels: first half * sigmoid(second half).
    o_ref[...] = (y[:, :c] * jax.nn.sigmoid(y[:, c:])).astype(o_ref.dtype)


# ----------------------------- wrapper ---------------------------------------
def wav2vec2_adapter_layer(hidden_states, weight, bias):
    """hidden_states: (B, C, T) f32 (PyTorch NCL); weight: (2C, C, K); bias: (2C,).

    Returns (B, C, T_out) f32 == F.glu(Conv1d(C, 2C, K, stride=S, padding=1)(x), dim=1).
    """
    B, C, T = hidden_states.shape
    K, S, P = ADAPTER_KERNEL_SIZE, ADAPTER_STRIDE, CONV_PAD
    assert weight.shape == (2 * C, C, K) and bias.shape == (2 * C,)
    # Kernel is specialized to the HF-default adapter config.
    assert K == 3 and S == 2 and P == 1 and T % S == 0
    t_out = (T + 2 * P - K) // S + 1
    assert t_out == T // S                         # packed rows == output rows
    assert (t_out - 1) * S + (K - 1) - P <= T - 1  # right zero-pad never read
    bt = B * t_out

    # --- layout plumbing (trace-time XLA, no in-kernel compute) --------------
    x_t = jnp.transpose(hidden_states, (0, 2, 1))        # (B, T, C) channel-last
    x_packed = x_t.reshape(bt, S * C)                    # free row-major reshape

    # im2col weight: w_mat[k*C + c_in, c_out] = weight[c_out, c_in, k]
    w_mat = jnp.transpose(weight, (2, 1, 0)).reshape(K * C, 2 * C)

    # bf16 MXU operands; bias / accumulation / activation stay f32.
    x_packed = x_packed.astype(jnp.bfloat16)
    w_mat = w_mat.astype(jnp.bfloat16)
    bias2d = bias.reshape(1, 2 * C).astype(jnp.float32)

    kernel = functools.partial(_adapter_glu_kernel, c=C, t_out=t_out)

    out = pl.pallas_call(
        kernel,
        out_shape=jax.ShapeDtypeStruct((bt, C), jnp.float32),
        grid_spec=pltpu.PrefetchScalarGridSpec(
            num_scalar_prefetch=0,
            grid=(1,),                                   # whole problem, one step
            in_specs=[
                pl.BlockSpec((bt, S * C), lambda i: (0, 0)),
                pl.BlockSpec((K * C, 2 * C), lambda i: (0, 0)),
                pl.BlockSpec((1, 2 * C), lambda i: (0, 0)),
            ],
            out_specs=pl.BlockSpec((bt, C), lambda i: (0, 0)),
        ),
        compiler_params=pltpu.CompilerParams(
            dimension_semantics=("arbitrary",)),
    )(x_packed, w_mat, bias2d)

    out = out.reshape(B, t_out, C)
    return jnp.transpose(out, (0, 2, 1))                 # back to (B, C, T_out)


# ----------------------------- pure-JAX reference ----------------------------
def _reference(hidden_states, weight, bias):
    # Mirror the kernel's bf16 operand rounding (accumulation stays f32) so the
    # check is tight; everything else is the exact module math.
    x = hidden_states.astype(jnp.bfloat16).astype(jnp.float32)
    w = weight.astype(jnp.bfloat16).astype(jnp.float32)
    y = lax.conv_general_dilated(
        x, w, window_strides=(ADAPTER_STRIDE,), padding=[(CONV_PAD, CONV_PAD)],
        dimension_numbers=("NCH", "OIH", "NCH"),
        precision=lax.Precision.HIGHEST)
    y = y + bias.reshape(1, -1, 1).astype(jnp.float32)
    a, b = jnp.split(y, 2, axis=1)                        # GLU over dim=1
    return a * jax.nn.sigmoid(b)


if __name__ == "__main__":
    key = jax.random.PRNGKey(0)
    kx, kw, kb = jax.random.split(key, 3)

    C, K = OUTPUT_HIDDEN_SIZE, ADAPTER_KERNEL_SIZE
    x = jax.random.normal(kx, (BATCH, C, SEQ), jnp.float32)
    # Conv1d(C, 2C, K) weight: (2C, C, K); bias: (2C,)
    # TODO(synk): opacus GradSampleModule only adds per-sample-gradient hooks
    # used during training; forward == wrapped Conv1d, so nothing extra here.
    weight = jax.random.normal(kw, (2 * C, C, K), jnp.float32) * 0.1
    bias = jax.random.normal(kb, (2 * C,), jnp.float32) * 0.1

    out = jax.block_until_ready(wav2vec2_adapter_layer(x, weight, bias))
    ref = jax.block_until_ready(_reference(x, weight, bias))

    t_out = (SEQ + 2 * CONV_PAD - K) // ADAPTER_STRIDE + 1
    assert out.shape == ref.shape == (BATCH, C, t_out)
    assert jnp.max(jnp.abs(out - ref)) < 2e-3, "mismatch vs reference"

    print("KERNEL_OK")
</pallas_src>

<mosaic_0001>
module attributes {stable_mosaic.version = 11 : i64} {
  func.func @_adapter_glu_kernel(%arg0: i32, %arg1: memref<16x64xbf16, #tpu.memory_space<vmem>>, %arg2: memref<96x64xbf16, #tpu.memory_space<vmem>>, %arg3: memref<1x64xf32, #tpu.memory_space<vmem>>, %arg4: memref<16x32xf32, #tpu.memory_space<vmem>>) attributes {dimension_semantics = [#tpu.dimension_semantics<arbitrary>], iteration_bounds = array<i64: 1>, scalar_prefetch = 0 : i64, scratch_operands = 0 : i64, tpu.core_type = #tpu.core_type<tc>, window_params = [{pipeline_mode = #tpu.pipeline_mode<synchronous>, transform_indices = @transform_0, window_bounds = array<i64: 16, 64>}, {pipeline_mode = #tpu.pipeline_mode<synchronous>, transform_indices = @transform_1, window_bounds = array<i64: 96, 64>}, {pipeline_mode = #tpu.pipeline_mode<synchronous>, transform_indices = @transform_2, window_bounds = array<i64: 1, 64>}, {pipeline_mode = #tpu.pipeline_mode<synchronous>, transform_indices = @transform_3, window_bounds = array<i64: 16, 32>}]} {
    %c0 = arith.constant 0 : index
    %c0_0 = arith.constant 0 : index
    %0 = vector.load %arg1[%c0, %c0_0] : memref<16x64xbf16, #tpu.memory_space<vmem>>, vector<16x64xbf16>
    %c0_1 = arith.constant 0 : index
    %c0_2 = arith.constant 0 : index
    %1 = vector.load %arg2[%c0_1, %c0_2] : memref<96x64xbf16, #tpu.memory_space<vmem>>, vector<96x64xbf16>
    %c0_3 = arith.constant 0 : index
    %c0_4 = arith.constant 0 : index
    %2 = vector.load %arg3[%c0_3, %c0_4] : memref<1x64xf32, #tpu.memory_space<vmem>>, vector<1x64xf32>
    %cst = arith.constant 0.000000e+00 : bf16
    %3 = vector.broadcast %cst : bf16 to vector<1x32xbf16>
    %4 = vector.extract_strided_slice %0 {offsets = [0, 32], sizes = [15, 32], strides = [1, 1]} : vector<16x64xbf16> to vector<15x32xbf16>
    %5 = tpu.concatenate %3, %4 in 0 : vector<1x32xbf16>, vector<15x32xbf16> -> vector<16x32xbf16>
    %6 = tpu.iota {dimensions = array<i32: 0>} : vector<16x1xi32>
    %c8_i32 = arith.constant 8 : i32
    %c0_i32 = arith.constant 0 : i32
    %7 = arith.cmpi eq, %c8_i32, %c0_i32 : i32
    %c1_i32 = arith.constant 1 : i32
    %8 = arith.select %7, %c1_i32, %c8_i32 : i32
    %9 = vector.broadcast %8 : i32 to vector<16x1xi32>
    %10 = arith.remsi %6, %9 : vector<16x1xi32>
    %c0_i32_5 = arith.constant 0 : i32
    %11 = vector.broadcast %c0_i32_5 : i32 to vector<16x1xi32>
    %12 = arith.cmpi ne, %10, %11 : vector<16x1xi32>
    %c0_i32_6 = arith.constant 0 : i32
    %13 = vector.broadcast %c0_i32_6 : i32 to vector<16x1xi32>
    %14 = arith.cmpi slt, %10, %13 : vector<16x1xi32>
    %c0_i32_7 = arith.constant 0 : i32
    %15 = arith.cmpi slt, %8, %c0_i32_7 : i32
    %16 = vector.broadcast %15 : i1 to vector<16x1xi1>
    %17 = vector.broadcast %16 : vector<16x1xi1> to vector<16x1xi1>
    %18 = arith.xori %14, %17 : vector<16x1xi1>
    %19 = arith.andi %18, %12 : vector<16x1xi1>
    %20 = vector.broadcast %8 : i32 to vector<16x1xi32>
    %21 = arith.addi %10, %20 : vector<16x1xi32>
    %22 = arith.select %19, %21, %10 : vector<16x1xi1>, vector<16x1xi32>
    %c0_i32_8 = arith.constant 0 : i32
    %23 = vector.broadcast %c0_i32_8 : i32 to vector<16x1xi32>
    %24 = arith.cmpi eq, %22, %23 : vector<16x1xi32>
    %cst_9 = arith.constant 0.000000e+00 : bf16
    %25 = vector.broadcast %cst_9 : bf16 to vector<16x32xbf16>
    %26 = vector.shape_cast %24 : vector<16x1xi1> to vector<16x1xi1>
    %27 = vector.broadcast %26 : vector<16x1xi1> to vector<16x32xi1>
    %28 = arith.select %27, %25, %5 : vector<16x32xi1>, vector<16x32xbf16>
    %29 = tpu.concatenate %28, %0 in 1 : vector<16x32xbf16>, vector<16x64xbf16> -> vector<16x96xbf16>
    %cst_10 = arith.constant dense<0.000000e+00> : vector<16x64xf32>
    %30 = tpu.matmul %29, %1, %cst_10 {dimension_numbers = #tpu.dot_dimension_numbers<[1], [0], [0], [1], [0, 0, 1, 1], [], []>} : vector<16x96xbf16>, vector<96x64xbf16>, vector<16x64xf32> -> vector<16x64xf32>
    %31 = vector.broadcast %2 : vector<1x64xf32> to vector<16x64xf32>
    %32 = arith.addf %30, %31 : vector<16x64xf32>
    %33 = vector.extract_strided_slice %32 {offsets = [0, 0], sizes = [16, 32], strides = [1, 1]} : vector<16x64xf32> to vector<16x32xf32>
    %34 = vector.extract_strided_slice %32 {offsets = [0, 32], sizes = [16, 32], strides = [1, 1]} : vector<16x64xf32> to vector<16x32xf32>
    %35 = arith.negf %34 : vector<16x32xf32>
    %36 = math.exp %35 : vector<16x32xf32>
    %cst_11 = arith.constant 1.000000e+00 : f32
    %37 = vector.broadcast %cst_11 : f32 to vector<16x32xf32>
    %38 = arith.addf %37, %36 : vector<16x32xf32>
    %39 = arith.divf %37, %38 : vector<16x32xf32>
    %40 = arith.mulf %33, %39 : vector<16x32xf32>
    %c0_12 = arith.constant 0 : index
    %c0_13 = arith.constant 0 : index
    %41 = vector.load %arg4[%c0_12, %c0_13] : memref<16x32xf32, #tpu.memory_space<vmem>>, vector<16x32xf32>
    tpu.vector_store %arg4[%c0_12, %c0_13], %40 {strides = array<i32>} : memref<16x32xf32, #tpu.memory_space<vmem>>, vector<16x32xf32>,
    return
  }
  func.func @transform_0(%arg0: i32) -> (i32, i32) {
    %c0_i32 = arith.constant 0 : i32
    %c0_i32_0 = arith.constant 0 : i32
    %c0_i32_1 = arith.constant 0 : i32
    return %c0_i32, %c0_i32_0 : i32, i32
  }
  func.func @transform_1(%arg0: i32) -> (i32, i32) {
    %c0_i32 = arith.constant 0 : i32
    %c0_i32_0 = arith.constant 0 : i32
    %c0_i32_1 = arith.constant 0 : i32
    return %c0_i32, %c0_i32_0 : i32, i32
  }
  func.func @transform_2(%arg0: i32) -> (i32, i32) {
    %c0_i32 = arith.constant 0 : i32
    %c0_i32_0 = arith.constant 0 : i32
    %c0_i32_1 = arith.constant 0 : i32
    return %c0_i32, %c0_i32_0 : i32, i32
  }
  func.func @transform_3(%arg0: i32) -> (i32, i32) {
    %c0_i32 = arith.constant 0 : i32
    %c0_i32_0 = arith.constant 0 : i32
    %c0_i32_1 = arith.constant 0 : i32
    return %c0_i32, %c0_i32_0 : i32, i32
  }
}

</mosaic_0001>

<bundles_post_ra>
// kernel: tpu_custom_call.1
= control target key start
LH: loop header
LB: loop body
LE: loop exit
PB: predicated region body
PF: predicated region fallthrough
CT: control target
= control target key end

     0   :  { %v308_v3 = vmov 0.0   ;;  %s309_s18 = smov 96   ;;  %vm310_vm0 = vmmov 0   ;;  %s378_s0 = inlined_call_operand.vmem [shape: bf16[16,64], index: 0, kind: input, shape index: {}]   ;;  %s379_s1 = inlined_call_operand.vmem [shape: bf16[96,64], index: 1, kind: input, shape index: {}]   ;;  %s380_s2 = inlined_call_operand.vmem [shape: f32[1,64], index: 2, kind: input, shape index: {}]   ;;  %s381_s3 = inlined_call_operand.hbm [shape: f32[16,32], index: 3, kind: output, shape index: {}]  }
   0x1   :  { %v269_v0 = vld [vmem:[%s378_s0] sm:$0xff]   ;;  %245 = vmatprep.subr.bf16.mxu0 %v308_v3  ;;  %v271_v6 = vld [vmem:[%s379_s1 + $0x8] sm:$0xff]   ;;  %v272_v8 = vld [vmem:[%s379_s1 + $0x10] sm:$0xff]   ;;  %257 = vmatprep.mubr.msk.bf16.mxu0 %vm310_vm0, %v308_v3 }
   0x2   :  { %v39_v1 = vshrl.u32 %v269_v0, 16  ;;  %v42_v2 = vshll.u32 %v269_v0, 16  ;;  %v270_v4 = vld [vmem:[%s379_s1] sm:$0xff]  }
   0x3   :  { %246 = vmatpush3.bf16.msra.mxu0 %v270_v4 }
   0x4   :  { %v41_v5 = vrot.slane %v39_v1, 7  ;;  %247 = vmatprep.subr.bf16.mxu0 %v308_v3 }
   0x6   :  { %v44_v7 = vor.u32 %v42_v2, %v41_v5 }
   0x7   :  { %248 = vmatpush3.bf16.msra.mxu0 %v271_v6 }
   0x8   :  { %45 = vrot.lane.b32.xlu0 %v44_v7, %s309_s18  ;;  %249 = vmatprep.subr.bf16.mxu0 %v308_v3 }
   0x9   :  { %8 = vsyncpa [#allocation3], 0  ;;  %s311_s20 = smov 32   ;;  %v273_v9 = vld [vmem:[%s379_s1 + $0x18] sm:$0xff]   ;;  %v274_v10 = vld [vmem:[%s379_s1 + $0x20] sm:$0xff]   ;;  %v52_v12 = vlaneseq  ;;  %v312_v17 = vmov 0  }
   0xa   :  { %v275_v11 = vld [vmem:[%s379_s1 + $0x28] sm:$0xff]   ;;  %vm48_vm5 = vcmask 1040384   ;;  %vm49_vm6 = vsmask.f32 256  ;;  %vm96_vm9 = vcmask 261120   ;;  %vm142_vm10 = vcmask 785408  }
   0xb   :  { %250 = vmatpush3.bf16.msra.mxu0 %v272_v8  ;;  %v53_v13 = vshrl.u32 %v52_v12, 7  ;;  %vm50_vm7 = vmand %vm48_vm5, %vm49_vm6  ;;  %v228_v26 = vld [vmem:[%s380_s2] ss:$0 sm:$0xff]  ;;  %s313_s2 = smov [#allocation2]  }
   0xc   :  { %94 = vrot.lane.b32.xlu0 %v269_v0, %s311_s20  ;;  %251 = vmatprep.subr.bf16.mxu0 %v308_v3  ;;  %s215_s28 = sshll.u32 %s313_s2, 4  ;;  %s216_s28 = int_to_ptr.vmem [resolvable:$true] %s215_s28 }
   0xd   :  { %v54_v14 = vadd.s32 8, %v53_v13  ;;  %v59_v15 = vand.u32 7, %v53_v13  ;;  %s284_s29 = scalar_lea.vmem %s216_s28, 256  ;;  %p289_p1 = scmp.lt.s32.totalorder %s216_s28, %s216_s28 }
   0xe   :  { %p285_p0 = scmp.ne.s32.totalorder %s216_s28, %s284_s29  ;;  %p290_p2 = scmp.lt.s32.totalorder %s284_s29, %s284_s29 }
   0xf   :  { %252 = vmatpush3.bf16.msra.mxu0 %v273_v9  ;;  %v66_v16 = vand.u32 7, %v54_v14  ;;  %vm79_vm1 = vcmp.eq.s32.totalorder %v59_v15, 0 }
  0x10   :  { %253 = vmatprep.subr.bf16.mxu0 %v308_v3  ;;  %vm85_vm3 = vmpackc.low %vm79_vm1, %vm79_vm1  ;;  %p291_p3 = por %p290_p2, %p289_p1 }
  0x11   :  { %vm80_vm2 = vcmp.eq.s32.totalorder %v66_v16, 0  ;;  %v87_v18 = vsel %vm85_vm3, 65537, %v312_v17 }
  0x12   :  { %vm86_vm4 = vmpackc.low %vm80_vm2, %vm80_vm2  ;;  %p292_p4 = pnand %p291_p3, %p285_p0 }
  0x13   :  { %254 = vmatpush3.bf16.msra.mxu0 %v274_v10  ;;  %v88_v19 = vsel %vm86_vm4, 65537, %v312_v17 }
  0x14   :  { %255 = vmatprep.subr.bf16.mxu0 %v308_v3  ;;  %v227_v20 = vcombine.low %v87_v18, %v88_v19 }
  0x16   :  { %vm92_vm8 = vcmp.ne.s16.totalorder %v227_v20, 0 }
  0x17   :  { %256 = vmatpush3.bf16.msra.mxu0 %v275_v11 }
  0x7a   :  { %v46_v21 = vpop.permute.xlu0 %45 }
  0x7b   :  { %v51_v22 = vsel %vm50_vm7, 0, %v46_v21 }
  0x7c   :  { %v93_v23 = vsel %vm92_vm8, 0, %v51_v22 }
  0x7e   :  { %v95_v24 = vpop.permute.xlu0 %94 }
  0x7f   :  { %v99_v25 = vsel %vm96_vm9, %v93_v23, %v95_v24 }
  0x80   :  { %258 = vmatmul.mubr.msk.bf16.vlgmr.msra.gmra.mrb[0].mxu0 %vm142_vm10, %v99_v25 }
 0x153   :  { %v179_v27 = vpop.f32.mrb[0].mxu0 }
 0x154   :  { %v180_v28 = vadd.f32 %v228_v26, %v179_v27  ;;  %v259_v29 = vpop.f32.mrb[1].mxu0 }
 0x155   :  { %v182_v30 = vpop.f32.mrb[2].mxu0 }
 0x156   :  { %v236_v31 = vmul.f32 -1.442695, %v180_v28  ;;  %v183_v32 = vadd.f32 %v228_v26, %v182_v30  ;;  %v260_v33 = vpop.f32.mrb[3].mxu0 }
 0x158   :  { %276 = vpow2.f32 %v236_v31  ;;  %v237_v34 = vmul.f32 -1.442695, %v183_v32 }
 0x15a   :  { %278 = vpow2.f32 %v237_v34 }
 0x162   :  { %v277_v35 = vpop.eup %276 }
 0x163   :  { %v192_v36 = vadd.f32 1.0, %v277_v35 }
 0x164   :  { %v279_v37 = vpop.eup %278 }
 0x165   :  { %280 = vrcp.f32 %v192_v36  ;;  %v193_v38 = vadd.f32 1.0, %v279_v37 }
 0x167   :  { %282 = vrcp.f32 %v193_v38 }
 0x16f   :  { %v281_v39 = vpop.eup %280 }
 0x170   :  { %200 = vrot.lane.b32.xlu1 %v281_v39, %s309_s18 }
 0x171   :  { %v283_v40 = vpop.eup %282 }
 0x174   :  { %202 = vrot.lane.b32.xlu1 %v283_v40, %s309_s18 }
 0x1e2   :  { %v201_v41 = vpop.permute.xlu1 %200 }
 0x1e3   :  { %v206_v42 = vmul.f32 %v201_v41, %v180_v28 }
 0x1e5   :  { %208 = vst.msk [vmem:[#allocation2] sm:$0xff] %vm96_vm9, %v206_v42 }
 0x1e6   :  { %v203_v43 = vpop.permute.xlu1 %202 }
 0x1e7   :  { %v207_v44 = vmul.f32 %v203_v43, %v183_v32 }
 0x1e9   :  { %209 = vst.msk [vmem:[#allocation2 + $0x8] sm:$0xff] %vm96_vm9, %v207_v44 }
 0x1ea   :  { %295 = shalt.err (!%p292_p4)
}
 0x1eb   :  { %s296_s5 = scalar_lea.hbm %s381_s3, 256 }
 0x1ec   :  { %p297_p5 = scmp.ne.s32.totalorder %s381_s3, %s296_s5  ;;  %p300_p6 = scmp.lt.u32.totalorder %s296_s5, %s381_s3 }
 0x1ee   :  { %p302_p7 = pnand %p300_p6, %p297_p5 }
 0x1f0   :  { %305 = shalt.err (!%p302_p7)
}
 0x1f1   :  { %s314_s10 = smov 128   ;;  %s315_s11 = smov 8  }
 0x1f2   :  { %221 = dma.vmem_to_hbm [thread:$0]  %s216_s28, 256, %s381_s3, [#allocation3], %s314_s10, %s314_s10, %s315_s11  }
 0x1f3   :  { %306 = dma.done.wait [#allocation3], 256  }
 0x1f4   :  { %307 = vsyncadd [#allocation3], 4294967040 }
 0x1f5   :  { %225 = vsyncpa [#allocation3], 1 }

</bundles_post_ra>
